<compile_context>
chip_gen: v6e
topology: v6e:2x2x1
jax: 0.10.0
libtpu: 0.0.40
codegen_flags: <defaults>
</compile_context>

<pallas_src>
import functools
import math

import jax
import jax.numpy as jnp
from jax.experimental import pallas as pl
from jax.experimental.pallas import tpu as pltpu

_MIB = 1024 * 1024


# ----------------------------- helpers -----------------------------

def _round_up(x, m):
    return ((x + m - 1) // m) * m


def _vmem_capacity_bytes():
    """Physical VMEM of the current generation; conservative default = v7x."""
    try:
        return int(pltpu.get_tpu_info().vmem_capacity_bytes)
    except Exception:
        return 64 * _MIB


def _const_block_spec(shape):
    """Grid-invariant operand (index_map -> (0, 0)); single-buffered when the
    installed JAX supports pipeline_mode=pl.Buffered."""
    idx = lambda i: (0, 0)
    try:
        return pl.BlockSpec(shape, idx, pipeline_mode=pl.Buffered(buffer_count=1)), True
    except Exception:
        return pl.BlockSpec(shape, idx), False


def _vmem_estimate_bytes(tile, f_in, padded, w_bytes, x_bytes, const_single):
    """Rough working-set estimate (bytes)."""
    const = 0
    for i in range(1, len(padded)):
        in_dim = f_in if i == 1 else padded[i - 1]
        const += in_dim * padded[i] * w_bytes + padded[i] * 4      # W + bias
    const += 2 * padded[-1] * 4                                     # gamma, beta
    if not const_single:
        const *= 2                                                  # double-buffered
    io = 2 * tile * (f_in * x_bytes + padded[-1] * 4)               # x / out, 2 bufs
    live = 3 * tile * max(padded) * 4                               # live f32 activations
    return const + io + live


# ----------------------------- fused Pallas kernel -----------------------------

def _fused_mlp_kernel(*refs, n_layers, f_out_true, eps, normalize_out):
    # refs = [x, w1, b1, ..., wn, bn, (gamma, beta,) out]
    x_ref = refs[0]
    o_ref = refs[-1]
    if normalize_out:
        g_ref, beta_ref = refs[-3], refs[-2]
        layer_refs = refs[1:-3]
    else:
        layer_refs = refs[1:-1]

    h = x_ref[...]
    for i in range(n_layers):
        w_ref = layer_refs[2 * i]
        b_ref = layer_refs[2 * i + 1]
        # Weights are already bf16 in HBM/VMEM; only the f32 activation is
        # truncated per matmul.  Accumulation stays f32 on the MXU.
        y = jnp.dot(h.astype(w_ref.dtype), w_ref[...],
                    preferred_element_type=jnp.float32) + b_ref[...]
        if i < n_layers - 1:
            y = jnp.maximum(y, 0.0)
            # TODO(synk): Dropout is identity at inference; no stochastic masking.
        h = y

    if normalize_out:
        # Padded feature lanes of h are exactly zero (zero-padded W/b), so plain
        # row sums give statistics over the TRUE feature count -- no lane mask.
        inv_n = 1.0 / float(f_out_true)
        mean = jnp.sum(h, axis=-1, keepdims=True) * inv_n
        mean_sq = jnp.sum(h * h, axis=-1, keepdims=True) * inv_n
        var = jnp.maximum(mean_sq - mean * mean, 0.0)
        inv = jax.lax.rsqrt(var + eps)
        # gamma/beta padded with zeros -> padded output lanes stay exactly zero.
        h = (h - mean) * inv * g_ref[...] + beta_ref[...]

    o_ref[...] = h.astype(o_ref.dtype)


# ----------------------------- FCEncoder forward -----------------------------

@functools.partial(jax.jit, static_argnames=("normalize_out", "use_bf16",
                                              "tile_b", "return_padded"))
def fc_encoder_forward(x, params, ln_params, *, normalize_out=True,
                       use_bf16=True, tile_b=1024, return_padded=False):
    B, F0 = x.shape
    n_layers = len(params)
    sizes = [F0] + [w.shape[1] for (w, _) in params]
    # Input feature dim kept at TRUE width (full-dim block); the rest lane-dense.
    padded = [F0] + [_round_up(s, 128) for s in sizes[1:]]

    w_dtype = jnp.bfloat16 if use_bf16 else jnp.float32
    w_bytes = 2 if use_bf16 else 4
    x_bytes = w_bytes

    cap = _vmem_capacity_bytes()
    vmem_budget = (cap * 3) // 4              # ~48 MiB on v7x, ~96 MiB on v5e/v6e

    _probe, const_single = _const_block_spec((1, 128))

    # ---- structural fallback: resident weights cannot fit even at tile=16 ----
    min_est = _vmem_estimate_bytes(16, F0, padded, w_bytes, x_bytes, const_single)
    if min_est > vmem_budget:
        # TODO(synk): feature/contraction-tiled Pallas path (grid K/N axes + f32
        # accumulator scratch) for very wide layers; plain-XLA fallback for now.
        h = x
        for i, (w, b) in enumerate(params):
            h = jnp.dot(h.astype(w_dtype), w.astype(w_dtype),
                        preferred_element_type=jnp.float32) + b.reshape(1, -1)
            if i < n_layers - 1:
                h = jnp.maximum(h, 0.0)
        if normalize_out:
            gamma, beta = ln_params
            mean = jnp.mean(h, axis=-1, keepdims=True)
            var = jnp.mean((h - mean) ** 2, axis=-1, keepdims=True)
            h = ((h - mean) * jax.lax.rsqrt(var + 1e-5)
                 * gamma.reshape(1, -1) + beta.reshape(1, -1))
        return h

    # ---- batch tiling (bf16 blocks need sublane multiples of 16) ----
    B16 = _round_up(B, 16)
    tile = min(_round_up(tile_b, 16), B16)
    while (_vmem_estimate_bytes(tile, F0, padded, w_bytes, x_bytes, const_single)
           > vmem_budget and tile > 16):
        tile = max(16, _round_up(tile // 2, 16))
    n_tiles = pl.cdiv(B16, tile)
    if B16 >= 64:
        n_tiles = max(n_tiles, 2)             # feed both v7x TensorCores
    tile = _round_up(pl.cdiv(B16, n_tiles), 16)   # dead-row padding < 16 * n_tiles
    B_pad = n_tiles * tile

    est = _vmem_estimate_bytes(tile, F0, padded, w_bytes, x_bytes, const_single)
    vmem_limit = int(min(cap - 2 * _MIB, max(2 * est, 32 * _MIB)))

    # ---- pack operands (weights pre-cast to bf16; bias/LN params stay f32) ----
    args = [jnp.pad(x.astype(w_dtype), ((0, B_pad - B), (0, 0)))]
    in_specs = [pl.BlockSpec((tile, F0), lambda i: (i, 0))]

    for li in range(1, len(sizes)):
        w, b = params[li - 1]
        in_dim = padded[li - 1]
        w_p = jnp.pad(w.astype(w_dtype),
                      ((0, in_dim - w.shape[0]), (0, padded[li] - w.shape[1])))
        b_p = jnp.pad(b.astype(jnp.float32).reshape(1, -1),
                      ((0, 0), (0, padded[li] - w.shape[1])))
        args += [w_p, b_p]
        w_spec, _ = _const_block_spec((in_dim, padded[li]))
        b_spec, _ = _const_block_spec((1, padded[li]))
        in_specs += [w_spec, b_spec]

    if normalize_out:
        gamma, beta = ln_params
        g_p = jnp.pad(gamma.astype(jnp.float32).reshape(1, -1),
                      ((0, 0), (0, padded[-1] - sizes[-1])))
        be_p = jnp.pad(beta.astype(jnp.float32).reshape(1, -1),
                       ((0, 0), (0, padded[-1] - sizes[-1])))
        args += [g_p, be_p]
        g_spec, _ = _const_block_spec((1, padded[-1]))
        be_spec, _ = _const_block_spec((1, padded[-1]))
        in_specs += [g_spec, be_spec]

    out = pl.pallas_call(
        functools.partial(_fused_mlp_kernel,
                          n_layers=n_layers,
                          f_out_true=sizes[-1],
                          eps=1e-5,
                          normalize_out=normalize_out),
        out_shape=jax.ShapeDtypeStruct((B_pad, padded[-1]), jnp.float32),
        grid=(n_tiles,),
        in_specs=in_specs,
        out_specs=pl.BlockSpec((tile, padded[-1]), lambda i: (i, 0)),
        compiler_params=pltpu.CompilerParams(
            dimension_semantics=("parallel",),
            vmem_limit_bytes=vmem_limit),
    )(*args)

    if return_padded:
        return out                             # avoids an extra HBM pass
    if B_pad == B and padded[-1] == sizes[-1]:
        return out
    return out[:B, :sizes[-1]]


# ----------------------------- parameter init -----------------------------

def init_fc_encoder_params(key, sizes):
    """Kaiming-uniform weights (fan_in, gain=sqrt(2)), zero biases,
    LayerNorm gamma=1 / beta=0 -- matching FCEncoder.initialize_weights."""
    params = []
    for i in range(1, len(sizes)):
        fan_in, fan_out = sizes[i - 1], sizes[i]
        key, sub = jax.random.split(key)
        bound = math.sqrt(6.0 / fan_in)        # kaiming_uniform_ default (a=0, fan_in)
        # stored as [in, out] (transpose of PyTorch's [out, in])
        w = jax.random.uniform(sub, (fan_in, fan_out), jnp.float32, -bound, bound)
        b = jnp.zeros((1, fan_out), jnp.float32)
        params.append((w, b))
    ln_gamma = jnp.ones((1, sizes[-1]), jnp.float32)
    ln_beta = jnp.zeros((1, sizes[-1]), jnp.float32)
    return params, (ln_gamma, ln_beta)


# ----------------------------- demo / smoke test -----------------------------

if __name__ == "__main__":
    sizes = (16, 32, 64, 32)                   # FCEncoder(sizes=[16, 32, 64, 32])
    batch = 8

    key = jax.random.PRNGKey(0)
    key, pkey, xkey = jax.random.split(key, 3)

    params, ln_params = init_fc_encoder_params(pkey, sizes)
    x = jax.random.normal(xkey, (batch, sizes[0]), jnp.float32)

    emb = fc_encoder_forward(x, params, ln_params, normalize_out=True)
    emb = jax.block_until_ready(emb)

    # shape + LayerNorm sanity: per-row mean ~ 0
    assert emb.shape == (batch, sizes[-1])
    row_mean = float(jnp.abs(jnp.mean(emb, axis=-1)).max())
    assert row_mean < 1e-3, row_mean

    # cross-check against a pure-JAX reference using the SAME bf16-input /
    # f32-accumulate matmul semantics as the kernel
    h_ref = x
    for i, (w, b) in enumerate(params):
        h_ref = jnp.dot(h_ref.astype(jnp.bfloat16), w.astype(jnp.bfloat16),
                        preferred_element_type=jnp.float32) + b
        if i < len(params) - 1:
            h_ref = jnp.maximum(h_ref, 0.0)
    mean = jnp.mean(h_ref, axis=-1, keepdims=True)
    var = jnp.mean((h_ref - mean) ** 2, axis=-1, keepdims=True)
    ref = (h_ref - mean) / jnp.sqrt(var + 1e-5) * ln_params[0] + ln_params[1]
    assert jnp.allclose(emb, ref, atol=1e-2, rtol=1e-2), \
        float(jnp.abs(emb - ref).max())

    print("KERNEL_OK")
</pallas_src>

<mosaic_0001>
module attributes {stable_mosaic.version = 11 : i64} {
  func.func @_fused_mlp_kernel(%arg0: i32, %arg1: memref<16x16xbf16, #tpu.memory_space<vmem>>, %arg2: memref<16x128xbf16, #tpu.memory_space<vmem>>, %arg3: memref<1x128xf32, #tpu.memory_space<vmem>>, %arg4: memref<128x128xbf16, #tpu.memory_space<vmem>>, %arg5: memref<1x128xf32, #tpu.memory_space<vmem>>, %arg6: memref<128x128xbf16, #tpu.memory_space<vmem>>, %arg7: memref<1x128xf32, #tpu.memory_space<vmem>>, %arg8: memref<1x128xf32, #tpu.memory_space<vmem>>, %arg9: memref<1x128xf32, #tpu.memory_space<vmem>>, %arg10: memref<16x128xf32, #tpu.memory_space<vmem>>) attributes {dimension_semantics = [#tpu.dimension_semantics<parallel>], iteration_bounds = array<i64: 1>, scalar_prefetch = 0 : i64, scratch_operands = 0 : i64, tpu.core_type = #tpu.core_type<tc>, window_params = [{transform_indices = @transform_0, window_bounds = array<i64: 16, 16>}, {pipeline_mode = #tpu.pipeline_mode<synchronous>, transform_indices = @transform_1, window_bounds = array<i64: 16, 128>}, {pipeline_mode = #tpu.pipeline_mode<synchronous>, transform_indices = @transform_2, window_bounds = array<i64: 1, 128>}, {pipeline_mode = #tpu.pipeline_mode<synchronous>, transform_indices = @transform_3, window_bounds = array<i64: 128, 128>}, {pipeline_mode = #tpu.pipeline_mode<synchronous>, transform_indices = @transform_4, window_bounds = array<i64: 1, 128>}, {pipeline_mode = #tpu.pipeline_mode<synchronous>, transform_indices = @transform_5, window_bounds = array<i64: 128, 128>}, {pipeline_mode = #tpu.pipeline_mode<synchronous>, transform_indices = @transform_6, window_bounds = array<i64: 1, 128>}, {pipeline_mode = #tpu.pipeline_mode<synchronous>, transform_indices = @transform_7, window_bounds = array<i64: 1, 128>}, {pipeline_mode = #tpu.pipeline_mode<synchronous>, transform_indices = @transform_8, window_bounds = array<i64: 1, 128>}, {transform_indices = @transform_9, window_bounds = array<i64: 16, 128>}]} {
    %c0 = arith.constant 0 : index
    %c0_0 = arith.constant 0 : index
    %0 = vector.load %arg1[%c0, %c0_0] : memref<16x16xbf16, #tpu.memory_space<vmem>>, vector<16x16xbf16>
    %c0_1 = arith.constant 0 : index
    %c0_2 = arith.constant 0 : index
    %1 = vector.load %arg2[%c0_1, %c0_2] : memref<16x128xbf16, #tpu.memory_space<vmem>>, vector<16x128xbf16>
    %cst = arith.constant dense<0.000000e+00> : vector<16x128xf32>
    %2 = tpu.matmul %0, %1, %cst {dimension_numbers = #tpu.dot_dimension_numbers<[1], [0], [0], [1], [0, 0, 1, 1], [], []>} : vector<16x16xbf16>, vector<16x128xbf16>, vector<16x128xf32> -> vector<16x128xf32>
    %c0_3 = arith.constant 0 : index
    %c0_4 = arith.constant 0 : index
    %3 = vector.load %arg3[%c0_3, %c0_4] : memref<1x128xf32, #tpu.memory_space<vmem>>, vector<1x128xf32>
    %4 = vector.broadcast %3 : vector<1x128xf32> to vector<16x128xf32>
    %5 = arith.addf %2, %4 : vector<16x128xf32>
    %cst_5 = arith.constant 0.000000e+00 : f32
    %6 = vector.broadcast %cst_5 : f32 to vector<16x128xf32>
    %7 = arith.maximumf %5, %6 : vector<16x128xf32>
    %8 = arith.truncf %7 : vector<16x128xf32> to vector<16x128xbf16>
    %c0_6 = arith.constant 0 : index
    %c0_7 = arith.constant 0 : index
    %9 = vector.load %arg4[%c0_6, %c0_7] : memref<128x128xbf16, #tpu.memory_space<vmem>>, vector<128x128xbf16>
    %cst_8 = arith.constant dense<0.000000e+00> : vector<16x128xf32>
    %10 = tpu.matmul %8, %9, %cst_8 {dimension_numbers = #tpu.dot_dimension_numbers<[1], [0], [0], [1], [0, 0, 1, 1], [], []>} : vector<16x128xbf16>, vector<128x128xbf16>, vector<16x128xf32> -> vector<16x128xf32>
    %c0_9 = arith.constant 0 : index
    %c0_10 = arith.constant 0 : index
    %11 = vector.load %arg5[%c0_9, %c0_10] : memref<1x128xf32, #tpu.memory_space<vmem>>, vector<1x128xf32>
    %12 = vector.broadcast %11 : vector<1x128xf32> to vector<16x128xf32>
    %13 = arith.addf %10, %12 : vector<16x128xf32>
    %cst_11 = arith.constant 0.000000e+00 : f32
    %14 = vector.broadcast %cst_11 : f32 to vector<16x128xf32>
    %15 = arith.maximumf %13, %14 : vector<16x128xf32>
    %16 = arith.truncf %15 : vector<16x128xf32> to vector<16x128xbf16>
    %c0_12 = arith.constant 0 : index
    %c0_13 = arith.constant 0 : index
    %17 = vector.load %arg6[%c0_12, %c0_13] : memref<128x128xbf16, #tpu.memory_space<vmem>>, vector<128x128xbf16>
    %cst_14 = arith.constant dense<0.000000e+00> : vector<16x128xf32>
    %18 = tpu.matmul %16, %17, %cst_14 {dimension_numbers = #tpu.dot_dimension_numbers<[1], [0], [0], [1], [0, 0, 1, 1], [], []>} : vector<16x128xbf16>, vector<128x128xbf16>, vector<16x128xf32> -> vector<16x128xf32>
    %c0_15 = arith.constant 0 : index
    %c0_16 = arith.constant 0 : index
    %19 = vector.load %arg7[%c0_15, %c0_16] : memref<1x128xf32, #tpu.memory_space<vmem>>, vector<1x128xf32>
    %20 = vector.broadcast %19 : vector<1x128xf32> to vector<16x128xf32>
    %21 = arith.addf %18, %20 : vector<16x128xf32>
    %cst_17 = arith.constant dense<0.000000e+00> : vector<16xf32>
    %22 = vector.multi_reduction <add>, %21, %cst_17 [1] : vector<16x128xf32> to vector<16xf32>
    %23 = vector.shape_cast %22 : vector<16xf32> to vector<16x1xf32>
    %cst_18 = arith.constant 3.125000e-02 : f32
    %24 = vector.broadcast %cst_18 : f32 to vector<16x1xf32>
    %25 = arith.mulf %23, %24 : vector<16x1xf32>
    %26 = arith.mulf %21, %21 : vector<16x128xf32>
    %cst_19 = arith.constant dense<0.000000e+00> : vector<16xf32>
    %27 = vector.multi_reduction <add>, %26, %cst_19 [1] : vector<16x128xf32> to vector<16xf32>
    %28 = vector.shape_cast %27 : vector<16xf32> to vector<16x1xf32>
    %cst_20 = arith.constant 3.125000e-02 : f32
    %29 = vector.broadcast %cst_20 : f32 to vector<16x1xf32>
    %30 = arith.mulf %28, %29 : vector<16x1xf32>
    %31 = arith.mulf %25, %25 : vector<16x1xf32>
    %32 = arith.subf %30, %31 : vector<16x1xf32>
    %cst_21 = arith.constant 0.000000e+00 : f32
    %33 = vector.broadcast %cst_21 : f32 to vector<16x1xf32>
    %34 = arith.maximumf %32, %33 : vector<16x1xf32>
    %cst_22 = arith.constant 9.99999974E-6 : f32
    %35 = vector.broadcast %cst_22 : f32 to vector<16x1xf32>
    %36 = arith.addf %34, %35 : vector<16x1xf32>
    %37 = math.rsqrt %36 : vector<16x1xf32>
    %38 = vector.broadcast %25 : vector<16x1xf32> to vector<16x128xf32>
    %39 = arith.subf %21, %38 : vector<16x128xf32>
    %40 = vector.broadcast %37 : vector<16x1xf32> to vector<16x128xf32>
    %41 = arith.mulf %39, %40 : vector<16x128xf32>
    %c0_23 = arith.constant 0 : index
    %c0_24 = arith.constant 0 : index
    %42 = vector.load %arg8[%c0_23, %c0_24] : memref<1x128xf32, #tpu.memory_space<vmem>>, vector<1x128xf32>
    %43 = vector.broadcast %42 : vector<1x128xf32> to vector<16x128xf32>
    %44 = arith.mulf %41, %43 : vector<16x128xf32>
    %c0_25 = arith.constant 0 : index
    %c0_26 = arith.constant 0 : index
    %45 = vector.load %arg9[%c0_25, %c0_26] : memref<1x128xf32, #tpu.memory_space<vmem>>, vector<1x128xf32>
    %46 = vector.broadcast %45 : vector<1x128xf32> to vector<16x128xf32>
    %47 = arith.addf %44, %46 : vector<16x128xf32>
    %c0_27 = arith.constant 0 : index
    %c0_28 = arith.constant 0 : index
    %48 = vector.load %arg10[%c0_27, %c0_28] : memref<16x128xf32, #tpu.memory_space<vmem>>, vector<16x128xf32>
    tpu.vector_store %arg10[%c0_27, %c0_28], %47 {strides = array<i32>} : memref<16x128xf32, #tpu.memory_space<vmem>>, vector<16x128xf32>,
    return
  }
  func.func @transform_0(%arg0: i32) -> (i32, i32) {
    %c0_i32 = arith.constant 0 : i32
    %c0_i32_0 = arith.constant 0 : i32
    return %arg0, %c0_i32 : i32, i32
  }
  func.func @transform_1(%arg0: i32) -> (i32, i32) {
    %c0_i32 = arith.constant 0 : i32
    %c0_i32_0 = arith.constant 0 : i32
    %c0_i32_1 = arith.constant 0 : i32
    return %c0_i32, %c0_i32_0 : i32, i32
  }
  func.func @transform_2(%arg0: i32) -> (i32, i32) {
    %c0_i32 = arith.constant 0 : i32
    %c0_i32_0 = arith.constant 0 : i32
    %c0_i32_1 = arith.constant 0 : i32
    return %c0_i32, %c0_i32_0 : i32, i32
  }
  func.func @transform_3(%arg0: i32) -> (i32, i32) {
    %c0_i32 = arith.constant 0 : i32
    %c0_i32_0 = arith.constant 0 : i32
    %c0_i32_1 = arith.constant 0 : i32
    return %c0_i32, %c0_i32_0 : i32, i32
  }
  func.func @transform_4(%arg0: i32) -> (i32, i32) {
    %c0_i32 = arith.constant 0 : i32
    %c0_i32_0 = arith.constant 0 : i32
    %c0_i32_1 = arith.constant 0 : i32
    return %c0_i32, %c0_i32_0 : i32, i32
  }
  func.func @transform_5(%arg0: i32) -> (i32, i32) {
    %c0_i32 = arith.constant 0 : i32
    %c0_i32_0 = arith.constant 0 : i32
    %c0_i32_1 = arith.constant 0 : i32
    return %c0_i32, %c0_i32_0 : i32, i32
  }
  func.func @transform_6(%arg0: i32) -> (i32, i32) {
    %c0_i32 = arith.constant 0 : i32
    %c0_i32_0 = arith.constant 0 : i32
    %c0_i32_1 = arith.constant 0 : i32
    return %c0_i32, %c0_i32_0 : i32, i32
  }
  func.func @transform_7(%arg0: i32) -> (i32, i32) {
    %c0_i32 = arith.constant 0 : i32
    %c0_i32_0 = arith.constant 0 : i32
    %c0_i32_1 = arith.constant 0 : i32
    return %c0_i32, %c0_i32_0 : i32, i32
  }
  func.func @transform_8(%arg0: i32) -> (i32, i32) {
    %c0_i32 = arith.constant 0 : i32
    %c0_i32_0 = arith.constant 0 : i32
    %c0_i32_1 = arith.constant 0 : i32
    return %c0_i32, %c0_i32_0 : i32, i32
  }
  func.func @transform_9(%arg0: i32) -> (i32, i32) {
    %c0_i32 = arith.constant 0 : i32
    %c0_i32_0 = arith.constant 0 : i32
    return %arg0, %c0_i32 : i32, i32
  }
}

</mosaic_0001>

<bundles_post_ra>
// kernel: fc_encoder_forward.1
= control target key start
LH: loop header
LB: loop body
LE: loop exit
PB: predicated region body
PF: predicated region fallthrough
CT: control target
= control target key end

     0   :  { %v496_v0 = vmov 0.0   ;;  %vm497_vm0 = vmmov 0   ;;  %vm55_vm1 = vcmask 130048   ;;  %s643_s1 = inlined_call_operand.vmem [shape: bf16[16,128], index: 1, kind: input, shape index: {}]   ;;  %s644_s0 = inlined_call_operand.vmem [shape: bf16[16,16], index: 0, kind: input, shape index: {}]   ;;  %s645_s3 = inlined_call_operand.vmem [shape: bf16[128,128], index: 3, kind: input, shape index: {}]   ;;  %s646_s5 = inlined_call_operand.vmem [shape: bf16[128,128], index: 5, kind: input, shape index: {}]   ;;  %s647_s2 = inlined_call_operand.vmem [shape: f32[1,128], index: 2, kind: input, shape index: {}]   ;;  %s648_s4 = inlined_call_operand.vmem [shape: f32[1,128], index: 4, kind: input, shape index: {}]   ;;  %s649_s6 = inlined_call_operand.vmem [shape: f32[1,128], index: 6, kind: input, shape index: {}]   ;;  %s650_s7 = inlined_call_operand.vmem [shape: f32[1,128], index: 7, kind: input, shape index: {}]   ;;  %s651_s8 = inlined_call_operand.vmem [shape: f32[1,128], index: 8, kind: input, shape index: {}]   ;;  %s652_s9 = inlined_call_operand.vmem [shape: f32[16,128], index: 9, kind: output, shape index: {}]  }
   0x1   :  { %426 = vmatprep.subr.bf16.mxu0 %v496_v0  ;;  %v474_v1 = vld [vmem:[%s643_s1] sm:$0xff]   ;;  %428 = vmatprep.mubr.msk.bf16.mxu0 %vm497_vm0, %v496_v0  ;;  %v476_v3 = vld [vmem:[%s645_s3 + $0x38] sm:$0xff]   ;;  %v477_v4 = vld [vmem:[%s645_s3 + $0x30] sm:$0xff]  }
   0x2   :  { %v475_v2 = vld [vmem:[%s644_s0] sm:$0xff]   ;;  %432 = vmatprep.subr.bf16.mxu1 %v496_v0  ;;  %448 = vmatprep.mubr.msk.bf16.mxu1 %vm497_vm0, %v496_v0  ;;  %v478_v5 = vld [vmem:[%s645_s3 + $0x28] sm:$0xff]   ;;  %v480_v7 = vld [vmem:[%s645_s3 + $0x18] sm:$0xff]  }
   0x3   :  { %427 = vmatpush3.bf16.msra.mxu0 %v474_v1  ;;  %433 = vmatpush3.bf16.msra.mxu1 %v476_v3  ;;  %v479_v6 = vld [vmem:[%s645_s3 + $0x20] sm:$0xff]   ;;  %v481_v8 = vld [vmem:[%s645_s3 + $0x10] sm:$0xff]   ;;  %v482_v9 = vld [vmem:[%s645_s3 + $0x8] sm:$0xff]  }
   0x4   :  { %452 = vmatprep.subr.bf16.mxu0 %v496_v0  ;;  %434 = vmatprep.subr.bf16.mxu1 %v496_v0  ;;  %v483_v10 = vld [vmem:[%s645_s3] sm:$0xff]   ;;  %v484_v11 = vld [vmem:[%s646_s5 + $0x38] sm:$0xff]   ;;  %v485_v12 = vld [vmem:[%s646_s5 + $0x30] sm:$0xff]  }
   0x5   :  { %v486_v13 = vld [vmem:[%s646_s5 + $0x28] sm:$0xff]   ;;  %v487_v14 = vld [vmem:[%s646_s5 + $0x20] sm:$0xff]   ;;  %v488_v15 = vld [vmem:[%s646_s5 + $0x18] sm:$0xff]  }
   0x6   :  { %429 = vmatmul.mubr.msk.bf16.vlgmr.msra.gmra.mxu0 %vm55_vm1, %v475_v2  ;;  %v382_v16 = vld [vmem:[%s647_s2] ss:$0 sm:$0xff]  ;;  %v489_v26 = vld [vmem:[%s646_s5 + $0x10] sm:$0xff]   ;;  %v490_v27 = vld [vmem:[%s646_s5 + $0x8] sm:$0xff]  }
   0x7   :  { %468 = vmatprep.mubr.msk.bf16.mxu0 %vm497_vm0, %v496_v0  ;;  %435 = vmatpush3.bf16.msra.mxu1 %v477_v4  ;;  %v491_v28 = vld [vmem:[%s646_s5] sm:$0xff]  }
   0x8   :  { %436 = vmatprep.subr.bf16.mxu1 %v496_v0  ;;  %453 = vmatpush3.bf16.msra.mxu0 %v484_v11  ;;  %v386_v29 = vld [vmem:[%s648_s4] ss:$0 sm:$0xff] }
   0x9   :  { %454 = vmatprep.subr.bf16.mxu0 %v496_v0  ;;  %v395_v39 = vld [vmem:[%s649_s6] ss:$0 sm:$0xff] }
   0xa   :  { %v404_v2 = vld [vmem:[%s650_s7] ss:$0 sm:$0xff] }
   0xb   :  { %437 = vmatpush3.bf16.msra.mxu1 %v478_v5  ;;  %v405_v4 = vld [vmem:[%s651_s8] ss:$0 sm:$0xff] }
   0xc   :  { %438 = vmatprep.subr.bf16.mxu1 %v496_v0  ;;  %455 = vmatpush3.bf16.msra.mxu0 %v485_v12 }
   0xd   :  { %456 = vmatprep.subr.bf16.mxu0 %v496_v0 }
   0xf   :  { %439 = vmatpush3.bf16.msra.mxu1 %v479_v6 }
  0x10   :  { %440 = vmatprep.subr.bf16.mxu1 %v496_v0  ;;  %457 = vmatpush3.bf16.msra.mxu0 %v486_v13 }
  0x11   :  { %458 = vmatprep.subr.bf16.mxu0 %v496_v0 }
  0x13   :  { %441 = vmatpush3.bf16.msra.mxu1 %v480_v7 }
  0x14   :  { %442 = vmatprep.subr.bf16.mxu1 %v496_v0  ;;  %459 = vmatpush3.bf16.msra.mxu0 %v487_v14 }
  0x15   :  { %460 = vmatprep.subr.bf16.mxu0 %v496_v0 }
  0x17   :  { %443 = vmatpush3.bf16.msra.mxu1 %v481_v8 }
  0x18   :  { %444 = vmatprep.subr.bf16.mxu1 %v496_v0  ;;  %461 = vmatpush3.bf16.msra.mxu0 %v488_v15 }
  0x19   :  { %462 = vmatprep.subr.bf16.mxu0 %v496_v0 }
  0x1b   :  { %445 = vmatpush3.bf16.msra.mxu1 %v482_v9 }
  0x1c   :  { %446 = vmatprep.subr.bf16.mxu1 %v496_v0  ;;  %463 = vmatpush3.bf16.msra.mxu0 %v489_v26 }
  0x1d   :  { %464 = vmatprep.subr.bf16.mxu0 %v496_v0 }
  0x1f   :  { %447 = vmatpush3.bf16.msra.mxu1 %v483_v10 }
  0x20   :  { %465 = vmatpush3.bf16.msra.mxu0 %v490_v27 }
  0x21   :  { %466 = vmatprep.subr.bf16.mxu0 %v496_v0 }
  0x24   :  { %467 = vmatpush3.bf16.msra.mxu0 %v491_v28 }
  0xc6   :  { %v93_v17 = vpop.f32.mrf.mxu0 }
  0xc7   :  { %v94_v19 = vadd.f32 %v382_v16, %v93_v17 }
  0xc8   :  { %v430_v18 = vpop.f32.mrf.mxu0 }
  0xc9   :  { %v100_v23 = vmax.f32 %v94_v19, 0.0 }
  0xca   :  { %v96_v20 = vpop.f32.mrf.mxu0 }
  0xcb   :  { %v97_v21 = vadd.f32 %v382_v16, %v96_v20 }
  0xcc   :  { %v431_v22 = vpop.f32.mrf.mxu0 }
  0xcd   :  { %v101_v24 = vmax.f32 %v97_v21, 0.0 }
  0xcf   :  { %v102_v25 = vpack.c.bf16 %v101_v24, %v100_v23 }
  0xd1   :  { %449 = vmatmul.mubr.bf16.vlgmr.msra.gmra.mxu1 %v102_v25 }
 0x191   :  { %v208_v30 = vpop.f32.mrf.mxu1 }
 0x192   :  { %v209_v32 = vadd.f32 %v386_v29, %v208_v30 }
 0x193   :  { %v450_v31 = vpop.f32.mrf.mxu1 }
 0x194   :  { %v215_v36 = vmax.f32 %v209_v32, 0.0 }
 0x195   :  { %v211_v33 = vpop.f32.mrf.mxu1 }
 0x196   :  { %v212_v34 = vadd.f32 %v386_v29, %v211_v33 }
 0x197   :  { %v451_v35 = vpop.f32.mrf.mxu1 }
 0x198   :  { %v216_v37 = vmax.f32 %v212_v34, 0.0 }
 0x19a   :  { %v217_v38 = vpack.c.bf16 %v216_v37, %v215_v36 }
 0x19c   :  { %469 = vmatmul.mubr.bf16.vlgmr.msra.gmra.mxu0 %v217_v38 }
 0x25c   :  { %v323_v40 = vpop.f32.mrf.mxu0 }
 0x25d   :  { %v324_v41 = vadd.f32 %v395_v39, %v323_v40 }
 0x25e   :  { %v470_v42 = vpop.f32.mrf.mxu0 }
 0x25f   :  { %330 = vadd.xlane.f32.xlu0 %v324_v41  ;;  %v336_v43 = vmul.f32 %v324_v41, %v324_v41 }
 0x260   :  { %v326_v44 = vpop.f32.mrf.mxu0 }
 0x261   :  { %v327_v45 = vadd.f32 %v395_v39, %v326_v44  ;;  %338 = vadd.xlane.f32.xlu1 %v336_v43 }
 0x262   :  { %v471_v46 = vpop.f32.mrf.mxu0 }
 0x263   :  { %332 = vadd.xlane.f32.xlu0 %v327_v45  ;;  %v337_v47 = vmul.f32 %v327_v45, %v327_v45 }
 0x265   :  { %340 = vadd.xlane.f32.xlu1 %v337_v47 }
 0x2e8   :  { %v331_v48 = vpop.xlane.xlu0 %330 }
 0x2e9   :  { %v334_v49 = vmul.f32 0.03125, %v331_v48 }
 0x2ea   :  { %v339_v50 = vpop.xlane.xlu1 %338 }
 0x2eb   :  { %v344_v51 = vmul.f32 %v334_v49, %v334_v49  ;;  %v342_v52 = vmul.f32 0.03125, %v339_v50  ;;  %v354_v0 = vsub.f32 %v324_v41, %v334_v49 }
 0x2ec   :  { %v333_v53 = vpop.xlane.xlu0 %332 }
 0x2ed   :  { %v346_v54 = vsub.f32 %v342_v52, %v344_v51  ;;  %v335_v55 = vmul.f32 0.03125, %v333_v53 }
 0x2ee   :  { %v341_v56 = vpop.xlane.xlu1 %340 }
 0x2ef   :  { %v348_v57 = vmax.f32 %v346_v54, 0.0  ;;  %v345_v58 = vmul.f32 %v335_v55, %v335_v55  ;;  %v343_v59 = vmul.f32 0.03125, %v341_v56  ;;  %v355_v6 = vsub.f32 %v327_v45, %v335_v55 }
 0x2f1   :  { %v350_v60 = vadd.f32 1e-05, %v348_v57  ;;  %v347_v61 = vsub.f32 %v343_v59, %v345_v58 }
 0x2f3   :  { %492 = vrsqrt.f32 %v350_v60  ;;  %v349_v62 = vmax.f32 %v347_v61, 0.0 }
 0x2f5   :  { %v351_v63 = vadd.f32 1e-05, %v349_v62 }
 0x2f7   :  { %494 = vrsqrt.f32 %v351_v63 }
 0x300   :  { %v493_v1 = vpop.eup %492 }
 0x301   :  { %v356_v3 = vmul.f32 %v493_v1, %v354_v0 }
 0x303   :  { %v365_v5 = vmul.f32 %v404_v2, %v356_v3 }
 0x304   :  { %v495_v7 = vpop.eup %494 }
 0x305   :  { %v374_v8 = vadd.f32 %v405_v4, %v365_v5  ;;  %v357_v9 = vmul.f32 %v495_v7, %v355_v6 }
 0x307   :  { %376 = vst [vmem:[%s652_s9] sm:$0xff] %v374_v8  ;;  %v366_v10 = vmul.f32 %v404_v2, %v357_v9 }
 0x309   :  { %v375_v11 = vadd.f32 %v405_v4, %v366_v10 }
 0x30b   :  { %377 = vst [vmem:[%s652_s9 + $0x8] sm:$0xff] %v375_v11 }

</bundles_post_ra>
